<compile_context>
chip_gen: v5e
topology: v5e:2x2
jax: 0.10.0
libtpu: 0.0.40
codegen_flags: <defaults>
</compile_context>

<pallas_src>
import jax
import jax.numpy as jnp
from jax import lax
from jax.experimental import pallas as pl
from jax.experimental.pallas import tpu as pltpu

# ---------------- problem sizes (small, consistent with the module) ----------------
B, S, E = 2, 8, 32          # batch, sequence, embed_size
H = 4                       # num_heads
Dh = E // H                 # head dim
HD = H * Dh                 # concatenated head dim (== E here)
F = 64                      # dim_feedforward
EB = E + 8                  # QKV slab rows: E weight rows + 1 bias row + 7 zero pad (8-aligned)
EPS = 1e-5
NEG_INF = -1e9


def _layernorm(x, g, b):
    mu = jnp.mean(x, axis=-1, keepdims=True)
    var = jnp.mean((x - mu) ** 2, axis=-1, keepdims=True)
    return (x - mu) * lax.rsqrt(var + EPS) * g + b


def encoder_block_kernel(x_ref, mask_ref, wqkv_ref, wo_ref, wff_ref, vec_ref, out_ref):
    """One grid step == one batch element.

    x_ref    : (1, 3, S, E)    [query tokens, key tokens, value tokens] of this batch element
    mask_ref : (1, S, S)
    wqkv_ref : (3, H, EB, Dh)  rows [0:E) weight, row E bias, rows (E:EB) zero pad
    wo_ref   : (H, Dh, E)
    wff_ref  : (2, E, F)       slot 0 = W1, slot 1 = W2^T
    vec_ref  : (8, F)          rows 0..5 = bo,g1,be1,bf2,g2,be2 in cols[:E]; row 6 = bf1
    out_ref  : (1, S, E)
    """
    scale = Dh ** -0.5

    x = x_ref[...]
    xq, xk, xv = x[0, 0], x[0, 1], x[0, 2]                       # (S, E)

    wqkv = wqkv_ref[...]                                         # (3, H, EB, Dh)
    wq, bq = wqkv[0, :, :E, :], wqkv[0, :, E:E + 1, :]           # (H,E,Dh), (H,1,Dh)
    wk, bk = wqkv[1, :, :E, :], wqkv[1, :, E:E + 1, :]
    wv, bv = wqkv[2, :, :E, :], wqkv[2, :, E:E + 1, :]

    # ---- head-batched QKV projections (one batched dot_general each, no lane slices) ----
    xq_h = jnp.broadcast_to(xq[None], (H, S, E))
    xk_h = jnp.broadcast_to(xk[None], (H, S, E))
    xv_h = jnp.broadcast_to(xv[None], (H, S, E))
    q_h = jnp.einsum('hse,hed->hsd', xq_h, wq, preferred_element_type=jnp.float32) + bq
    k_h = jnp.einsum('hse,hed->hsd', xk_h, wk, preferred_element_type=jnp.float32) + bk
    v_h = jnp.einsum('hse,hed->hsd', xv_h, wv, preferred_element_type=jnp.float32) + bv

    # ---- all-head scores + single softmax over the whole (H, S, S) block ----
    s = jnp.einsum('hqd,hkd->hqk', q_h, k_h, preferred_element_type=jnp.float32) * scale
    masked = mask_ref[...][0] == 0                               # (S, S), head-invariant
    s = jnp.where(masked[None], jnp.float32(NEG_INF), s)
    s = s - jnp.max(s, axis=-1, keepdims=True)
    p = jnp.exp(s)
    p = p / jnp.sum(p, axis=-1, keepdims=True)

    ctx = jnp.einsum('hqk,hkd->hqd', p, v_h, preferred_element_type=jnp.float32)   # (H,S,Dh)

    # ---- packed small vectors ----
    vec = vec_ref[...]                                           # (8, F)
    bo, g1, be1 = vec[0:1, :E], vec[1:2, :E], vec[2:3, :E]
    bf2, g2, be2 = vec[3:4, :E], vec[4:5, :E], vec[5:6, :E]
    bf1 = vec[6:7, :]                                            # (1, F)

    # ---- output projection: batched per-head matmul + head-sum ----
    attn_h = jnp.einsum('hsd,hde->hse', ctx, wo_ref[...], preferred_element_type=jnp.float32)
    attn = jnp.sum(attn_h, axis=0) + bo                          # (S, E)

    # ---- residual + norm1 (dropout == identity in eval mode) ----
    x1 = _layernorm(xq + attn, g1, be1)

    # ---- FFN: Linear -> ReLU -> Linear (W2 stored transposed to share one weight slab) ----
    w1 = wff_ref[0]                                              # (E, F)
    w2t = wff_ref[1]                                             # (E, F) == W2^T
    hid = jnp.maximum(jnp.dot(x1, w1, preferred_element_type=jnp.float32) + bf1, 0.0)
    ff = jnp.einsum('sf,ef->se', hid, w2t, preferred_element_type=jnp.float32) + bf2

    # ---- residual + norm2 ----
    x2 = _layernorm(x1 + ff, g2, be2)
    out_ref[0] = x2.astype(out_ref.dtype)


def _pack_params(params):
    (wq, bq, wk, bk, wv, bv, wo, bo, g1, be1, w1, bf1, w2, bf2, g2, be2) = params

    def pack_wb(w, b):    # (H,E,Dh) + (H,1,Dh) -> (H, EB, Dh), zero-padded to 8-aligned rows
        pad = jnp.zeros((H, EB - E - 1, Dh), jnp.float32)
        return jnp.concatenate([w, b, pad], axis=1)

    wqkv = jnp.stack([pack_wb(wq, bq), pack_wb(wk, bk), pack_wb(wv, bv)], axis=0)  # (3,H,EB,Dh)
    wff = jnp.stack([w1, w2.T], axis=0)                                            # (2,E,F)

    def row(v):           # pad an (1,E) vector to (1,F)
        return jnp.pad(v, ((0, 0), (0, F - v.shape[1])))

    vec = jnp.concatenate([row(bo), row(g1), row(be1), row(bf2), row(g2), row(be2),
                           bf1, jnp.zeros((1, F), jnp.float32)], axis=0)           # (8,F)
    return wqkv, wo, wff, vec


def encoder_block(query, key, value, mask, params):
    wqkv, wo, wff, vec = _pack_params(params)
    x_stacked = jnp.stack([query, key, value], axis=1)            # (B, 3, S, E)

    kernel = pl.pallas_call(
        encoder_block_kernel,
        out_shape=jax.ShapeDtypeStruct((B, S, E), jnp.float32),
        grid=(B,),
        in_specs=[
            pl.BlockSpec((1, 3, S, E), lambda b: (b, 0, 0, 0)),   # activations: tiled over batch
            pl.BlockSpec((1, S, S), lambda b: (b, 0, 0)),         # mask: tiled over batch
            pl.BlockSpec((3, H, EB, Dh), lambda b: (0, 0, 0, 0)), # weights: resident
            pl.BlockSpec((H, Dh, E), lambda b: (0, 0, 0)),
            pl.BlockSpec((2, E, F), lambda b: (0, 0, 0)),
            pl.BlockSpec((8, F), lambda b: (0, 0)),
        ],
        out_specs=pl.BlockSpec((1, S, E), lambda b: (b, 0, 0)),
        compiler_params=pltpu.CompilerParams(dimension_semantics=("parallel",)),
    )
    return kernel(x_stacked, mask, wqkv, wo, wff, vec)


# ---------------- pure-JAX reference for verification ----------------
def reference(query, key, value, mask, params):
    (wq, bq, wk, bk, wv, bv, wo, bo, g1, be1, w1, bf1, w2, bf2, g2, be2) = params
    scale = Dh ** -0.5
    qh = jnp.einsum('bse,hed->bhsd', query, wq) + bq[None]
    kh = jnp.einsum('bse,hed->bhsd', key, wk) + bk[None]
    vh = jnp.einsum('bse,hed->bhsd', value, wv) + bv[None]
    scores = jnp.einsum('bhqd,bhkd->bhqk', qh, kh) * scale
    scores = jnp.where(mask[:, None, :, :] == 0, NEG_INF, scores)
    p = jax.nn.softmax(scores, axis=-1)
    oh = jnp.einsum('bhqk,bhkd->bhqd', p, vh)
    attn = jnp.einsum('bhsd,hde->bse', oh, wo) + bo[None]
    x1 = _layernorm(query + attn, g1[None], be1[None])
    hid = jax.nn.relu(jnp.einsum('bse,ef->bsf', x1, w1) + bf1[None])
    ff = jnp.einsum('bsf,fe->bse', hid, w2) + bf2[None]
    return _layernorm(x1 + ff, g2[None], be2[None])


if __name__ == "__main__":
    key0 = jax.random.PRNGKey(0)
    keys = jax.random.split(key0, 16)
    sc = 0.1

    # deterministic synthetic parameters (shapes implied by EncoderBlock.__init__)
    wq = jax.random.normal(keys[0], (H, E, Dh), jnp.float32) * sc
    bq = jax.random.normal(keys[1], (H, 1, Dh), jnp.float32) * sc
    wk = jax.random.normal(keys[2], (H, E, Dh), jnp.float32) * sc
    bk = jax.random.normal(keys[3], (H, 1, Dh), jnp.float32) * sc
    wv = jax.random.normal(keys[4], (H, E, Dh), jnp.float32) * sc
    bv = jax.random.normal(keys[5], (H, 1, Dh), jnp.float32) * sc
    wo = jax.random.normal(keys[6], (H, Dh, E), jnp.float32) * sc
    bo = jax.random.normal(keys[7], (1, E), jnp.float32) * sc
    g1 = jnp.ones((1, E), jnp.float32)
    be1 = jnp.zeros((1, E), jnp.float32)
    w1 = jax.random.normal(keys[8], (E, F), jnp.float32) * sc
    bf1 = jax.random.normal(keys[9], (1, F), jnp.float32) * sc
    w2 = jax.random.normal(keys[10], (F, E), jnp.float32) * sc
    bf2 = jax.random.normal(keys[11], (1, E), jnp.float32) * sc
    g2 = jnp.ones((1, E), jnp.float32)
    be2 = jnp.zeros((1, E), jnp.float32)
    params = (wq, bq, wk, bk, wv, bv, wo, bo, g1, be1, w1, bf1, w2, bf2, g2, be2)

    query = jax.random.normal(keys[12], (B, S, E), jnp.float32)
    key_in = jax.random.normal(keys[13], (B, S, E), jnp.float32)
    value = jax.random.normal(keys[14], (B, S, E), jnp.float32)
    # causal mask (0 => masked out), broadcast per batch
    mask = jnp.broadcast_to(jnp.tril(jnp.ones((S, S), jnp.float32)), (B, S, S))

    out = encoder_block(query, key_in, value, mask, params)
    out = jax.block_until_ready(out)

    ref = reference(query, key_in, value, mask, params)
    assert out.shape == (B, S, E)
    assert jnp.allclose(out, ref, atol=1e-4, rtol=1e-4), float(jnp.max(jnp.abs(out - ref)))
    # TODO(synk): nn.Dropout(p=0.1) is a no-op in eval mode; training-mode RNG dropout not implemented.
    print("KERNEL_OK")
</pallas_src>

<mosaic_0001>
module attributes {stable_mosaic.version = 11 : i64} {
  func.func @encoder_block_kernel(%arg0: i32, %arg1: memref<1x3x8x32xf32, #tpu.memory_space<vmem>>, %arg2: memref<1x8x8xf32, #tpu.memory_space<vmem>>, %arg3: memref<3x4x40x8xf32, #tpu.memory_space<vmem>>, %arg4: memref<4x8x32xf32, #tpu.memory_space<vmem>>, %arg5: memref<2x32x64xf32, #tpu.memory_space<vmem>>, %arg6: memref<8x64xf32, #tpu.memory_space<vmem>>, %arg7: memref<1x8x32xf32, #tpu.memory_space<vmem>>) attributes {dimension_semantics = [#tpu.dimension_semantics<parallel>], iteration_bounds = array<i64: 2>, scalar_prefetch = 0 : i64, scratch_operands = 0 : i64, tpu.core_type = #tpu.core_type<tc>, window_params = [{transform_indices = @transform_0, window_bounds = array<i64: 1, 3, 8, 32>}, {transform_indices = @transform_1, window_bounds = array<i64: 1, 8, 8>}, {pipeline_mode = #tpu.pipeline_mode<synchronous>, transform_indices = @transform_2, window_bounds = array<i64: 3, 4, 40, 8>}, {pipeline_mode = #tpu.pipeline_mode<synchronous>, transform_indices = @transform_3, window_bounds = array<i64: 4, 8, 32>}, {pipeline_mode = #tpu.pipeline_mode<synchronous>, transform_indices = @transform_4, window_bounds = array<i64: 2, 32, 64>}, {pipeline_mode = #tpu.pipeline_mode<synchronous>, transform_indices = @transform_5, window_bounds = array<i64: 8, 64>}, {transform_indices = @transform_6, window_bounds = array<i64: 1, 8, 32>}]} {
    %c0 = arith.constant 0 : index
    %c0_0 = arith.constant 0 : index
    %c0_1 = arith.constant 0 : index
    %c0_2 = arith.constant 0 : index
    %0 = vector.load %arg1[%c0, %c0_0, %c0_1, %c0_2] : memref<1x3x8x32xf32, #tpu.memory_space<vmem>>, vector<1x3x8x32xf32>
    %1 = vector.extract_strided_slice %0 {offsets = [0, 0, 0, 0], sizes = [1, 1, 8, 32], strides = [1, 1, 1, 1]} : vector<1x3x8x32xf32> to vector<1x1x8x32xf32>
    %2 = vector.shape_cast %1 : vector<1x1x8x32xf32> to vector<8x32xf32>
    %3 = vector.extract_strided_slice %0 {offsets = [0, 1, 0, 0], sizes = [1, 1, 8, 32], strides = [1, 1, 1, 1]} : vector<1x3x8x32xf32> to vector<1x1x8x32xf32>
    %4 = vector.shape_cast %3 : vector<1x1x8x32xf32> to vector<8x32xf32>
    %5 = vector.extract_strided_slice %0 {offsets = [0, 2, 0, 0], sizes = [1, 1, 8, 32], strides = [1, 1, 1, 1]} : vector<1x3x8x32xf32> to vector<1x1x8x32xf32>
    %6 = vector.shape_cast %5 : vector<1x1x8x32xf32> to vector<8x32xf32>
    %c0_3 = arith.constant 0 : index
    %c0_4 = arith.constant 0 : index
    %c0_5 = arith.constant 0 : index
    %c0_6 = arith.constant 0 : index
    %7 = vector.load %arg3[%c0_3, %c0_4, %c0_5, %c0_6] : memref<3x4x40x8xf32, #tpu.memory_space<vmem>>, vector<3x4x40x8xf32>
    %8 = vector.extract_strided_slice %7 {offsets = [0, 0, 0, 0], sizes = [1, 4, 32, 8], strides = [1, 1, 1, 1]} : vector<3x4x40x8xf32> to vector<1x4x32x8xf32>
    %9 = vector.shape_cast %8 : vector<1x4x32x8xf32> to vector<4x32x8xf32>
    %10 = vector.extract_strided_slice %7 {offsets = [0, 0, 32, 0], sizes = [1, 4, 1, 8], strides = [1, 1, 1, 1]} : vector<3x4x40x8xf32> to vector<1x4x1x8xf32>
    %11 = vector.shape_cast %10 : vector<1x4x1x8xf32> to vector<4x1x8xf32>
    %12 = vector.extract_strided_slice %7 {offsets = [1, 0, 0, 0], sizes = [1, 4, 32, 8], strides = [1, 1, 1, 1]} : vector<3x4x40x8xf32> to vector<1x4x32x8xf32>
    %13 = vector.shape_cast %12 : vector<1x4x32x8xf32> to vector<4x32x8xf32>
    %14 = vector.extract_strided_slice %7 {offsets = [1, 0, 32, 0], sizes = [1, 4, 1, 8], strides = [1, 1, 1, 1]} : vector<3x4x40x8xf32> to vector<1x4x1x8xf32>
    %15 = vector.shape_cast %14 : vector<1x4x1x8xf32> to vector<4x1x8xf32>
    %16 = vector.extract_strided_slice %7 {offsets = [2, 0, 0, 0], sizes = [1, 4, 32, 8], strides = [1, 1, 1, 1]} : vector<3x4x40x8xf32> to vector<1x4x32x8xf32>
    %17 = vector.shape_cast %16 : vector<1x4x32x8xf32> to vector<4x32x8xf32>
    %18 = vector.extract_strided_slice %7 {offsets = [2, 0, 32, 0], sizes = [1, 4, 1, 8], strides = [1, 1, 1, 1]} : vector<3x4x40x8xf32> to vector<1x4x1x8xf32>
    %19 = vector.shape_cast %18 : vector<1x4x1x8xf32> to vector<4x1x8xf32>
    %20 = vector.shape_cast %2 : vector<8x32xf32> to vector<1x8x32xf32>
    %21 = vector.shape_cast %20 : vector<1x8x32xf32> to vector<1x8x32xf32>
    %22 = vector.broadcast %21 : vector<1x8x32xf32> to vector<4x8x32xf32>
    %23 = vector.shape_cast %4 : vector<8x32xf32> to vector<1x8x32xf32>
    %24 = vector.shape_cast %23 : vector<1x8x32xf32> to vector<1x8x32xf32>
    %25 = vector.broadcast %24 : vector<1x8x32xf32> to vector<4x8x32xf32>
    %26 = vector.shape_cast %6 : vector<8x32xf32> to vector<1x8x32xf32>
    %27 = vector.shape_cast %26 : vector<1x8x32xf32> to vector<1x8x32xf32>
    %28 = vector.broadcast %27 : vector<1x8x32xf32> to vector<4x8x32xf32>
    "tpu.trace_start"() <{level = 10 : i32, message = "hse,hed->hsd"}> : () -> ()
    %cst = arith.constant dense<0.000000e+00> : vector<4x8x8xf32>
    %29 = tpu.matmul %22, %9, %cst {dimension_numbers = #tpu.dot_dimension_numbers<[2], [1], [1], [2], [0, 0, 0, 1, 1, 2], [0], [0]>} : vector<4x8x32xf32>, vector<4x32x8xf32>, vector<4x8x8xf32> -> vector<4x8x8xf32>
    "tpu.trace_stop"() : () -> ()
    %30 = vector.broadcast %11 : vector<4x1x8xf32> to vector<4x8x8xf32>
    %31 = arith.addf %29, %30 : vector<4x8x8xf32>
    "tpu.trace_start"() <{level = 10 : i32, message = "hse,hed->hsd"}> : () -> ()
    %cst_7 = arith.constant dense<0.000000e+00> : vector<4x8x8xf32>
    %32 = tpu.matmul %25, %13, %cst_7 {dimension_numbers = #tpu.dot_dimension_numbers<[2], [1], [1], [2], [0, 0, 0, 1, 1, 2], [0], [0]>} : vector<4x8x32xf32>, vector<4x32x8xf32>, vector<4x8x8xf32> -> vector<4x8x8xf32>
    "tpu.trace_stop"() : () -> ()
    %33 = vector.broadcast %15 : vector<4x1x8xf32> to vector<4x8x8xf32>
    %34 = arith.addf %32, %33 : vector<4x8x8xf32>
    "tpu.trace_start"() <{level = 10 : i32, message = "hse,hed->hsd"}> : () -> ()
    %cst_8 = arith.constant dense<0.000000e+00> : vector<4x8x8xf32>
    %35 = tpu.matmul %28, %17, %cst_8 {dimension_numbers = #tpu.dot_dimension_numbers<[2], [1], [1], [2], [0, 0, 0, 1, 1, 2], [0], [0]>} : vector<4x8x32xf32>, vector<4x32x8xf32>, vector<4x8x8xf32> -> vector<4x8x8xf32>
    "tpu.trace_stop"() : () -> ()
    %36 = vector.broadcast %19 : vector<4x1x8xf32> to vector<4x8x8xf32>
    %37 = arith.addf %35, %36 : vector<4x8x8xf32>
    "tpu.trace_start"() <{level = 10 : i32, message = "hqd,hkd->hqk"}> : () -> ()
    %cst_9 = arith.constant dense<0.000000e+00> : vector<4x8x8xf32>
    %38 = tpu.matmul %31, %34, %cst_9 {dimension_numbers = #tpu.dot_dimension_numbers<[2], [2], [1], [1], [0, 0, 0, 1, 1, 1], [0], [0]>} : vector<4x8x8xf32>, vector<4x8x8xf32>, vector<4x8x8xf32> -> vector<4x8x8xf32>
    "tpu.trace_stop"() : () -> ()
    %cst_10 = arith.constant 0.353553385 : f32
    %39 = vector.broadcast %cst_10 : f32 to vector<4x8x8xf32>
    %40 = arith.mulf %38, %39 : vector<4x8x8xf32>
    %c0_11 = arith.constant 0 : index
    %c0_12 = arith.constant 0 : index
    %c0_13 = arith.constant 0 : index
    %41 = vector.load %arg2[%c0_11, %c0_12, %c0_13] : memref<1x8x8xf32, #tpu.memory_space<vmem>>, vector<1x8x8xf32>
    %42 = vector.shape_cast %41 : vector<1x8x8xf32> to vector<8x8xf32>
    %cst_14 = arith.constant 0.000000e+00 : f32
    %43 = vector.broadcast %cst_14 : f32 to vector<8x8xf32>
    %44 = arith.cmpf oeq, %42, %43 : vector<8x8xf32>
    %45 = vector.shape_cast %44 : vector<8x8xi1> to vector<1x8x8xi1>
    %cst_15 = arith.constant -1.000000e+09 : f32
    %46 = vector.shape_cast %45 : vector<1x8x8xi1> to vector<1x8x8xi1>
    %47 = vector.broadcast %46 : vector<1x8x8xi1> to vector<4x8x8xi1>
    %48 = vector.broadcast %cst_15 : f32 to vector<4x8x8xf32>
    %49 = arith.select %47, %48, %40 : vector<4x8x8xi1>, vector<4x8x8xf32>
    %cst_16 = arith.constant dense<0xFF800000> : vector<4x8xf32>
    %50 = vector.multi_reduction <maximumf>, %49, %cst_16 [2] : vector<4x8x8xf32> to vector<4x8xf32>
    %51 = vector.shape_cast %50 : vector<4x8xf32> to vector<4x8x1xf32>
    %52 = vector.broadcast %51 : vector<4x8x1xf32> to vector<4x8x8xf32>
    %53 = arith.subf %49, %52 : vector<4x8x8xf32>
    %54 = math.exp %53 : vector<4x8x8xf32>
    %cst_17 = arith.constant dense<0.000000e+00> : vector<4x8xf32>
    %55 = vector.multi_reduction <add>, %54, %cst_17 [2] : vector<4x8x8xf32> to vector<4x8xf32>
    %56 = vector.shape_cast %55 : vector<4x8xf32> to vector<4x8x1xf32>
    %57 = vector.broadcast %56 : vector<4x8x1xf32> to vector<4x8x8xf32>
    %58 = arith.divf %54, %57 : vector<4x8x8xf32>
    "tpu.trace_start"() <{level = 10 : i32, message = "hqk,hkd->hqd"}> : () -> ()
    %cst_18 = arith.constant dense<0.000000e+00> : vector<4x8x8xf32>
    %59 = tpu.matmul %58, %37, %cst_18 {dimension_numbers = #tpu.dot_dimension_numbers<[2], [1], [1], [2], [0, 0, 0, 1, 1, 2], [0], [0]>} : vector<4x8x8xf32>, vector<4x8x8xf32>, vector<4x8x8xf32> -> vector<4x8x8xf32>
    "tpu.trace_stop"() : () -> ()
    %c0_19 = arith.constant 0 : index
    %c0_20 = arith.constant 0 : index
    %60 = vector.load %arg6[%c0_19, %c0_20] : memref<8x64xf32, #tpu.memory_space<vmem>>, vector<8x64xf32>
    %61 = vector.extract_strided_slice %60 {offsets = [0, 0], sizes = [1, 32], strides = [1, 1]} : vector<8x64xf32> to vector<1x32xf32>
    %62 = vector.extract_strided_slice %60 {offsets = [1, 0], sizes = [1, 32], strides = [1, 1]} : vector<8x64xf32> to vector<1x32xf32>
    %63 = vector.extract_strided_slice %60 {offsets = [2, 0], sizes = [1, 32], strides = [1, 1]} : vector<8x64xf32> to vector<1x32xf32>
    %64 = vector.extract_strided_slice %60 {offsets = [3, 0], sizes = [1, 32], strides = [1, 1]} : vector<8x64xf32> to vector<1x32xf32>
    %65 = vector.extract_strided_slice %60 {offsets = [4, 0], sizes = [1, 32], strides = [1, 1]} : vector<8x64xf32> to vector<1x32xf32>
    %66 = vector.extract_strided_slice %60 {offsets = [5, 0], sizes = [1, 32], strides = [1, 1]} : vector<8x64xf32> to vector<1x32xf32>
    %67 = vector.extract_strided_slice %60 {offsets = [6, 0], sizes = [1, 64], strides = [1, 1]} : vector<8x64xf32> to vector<1x64xf32>
    %c0_21 = arith.constant 0 : index
    %c0_22 = arith.constant 0 : index
    %c0_23 = arith.constant 0 : index
    %68 = vector.load %arg4[%c0_21, %c0_22, %c0_23] : memref<4x8x32xf32, #tpu.memory_space<vmem>>, vector<4x8x32xf32>
    "tpu.trace_start"() <{level = 10 : i32, message = "hsd,hde->hse"}> : () -> ()
    %cst_24 = arith.constant dense<0.000000e+00> : vector<4x8x32xf32>
    %69 = tpu.matmul %59, %68, %cst_24 {dimension_numbers = #tpu.dot_dimension_numbers<[2], [1], [1], [2], [0, 0, 0, 1, 1, 2], [0], [0]>} : vector<4x8x8xf32>, vector<4x8x32xf32>, vector<4x8x32xf32> -> vector<4x8x32xf32>
    "tpu.trace_stop"() : () -> ()
    %cst_25 = arith.constant dense<0.000000e+00> : vector<8x32xf32>
    %70 = vector.multi_reduction <add>, %69, %cst_25 [0] : vector<4x8x32xf32> to vector<8x32xf32>
    %71 = vector.broadcast %61 : vector<1x32xf32> to vector<8x32xf32>
    %72 = arith.addf %70, %71 : vector<8x32xf32>
    %73 = arith.addf %2, %72 : vector<8x32xf32>
    %cst_26 = arith.constant dense<0.000000e+00> : vector<8xf32>
    %74 = vector.multi_reduction <add>, %73, %cst_26 [1] : vector<8x32xf32> to vector<8xf32>
    %75 = vector.shape_cast %74 : vector<8xf32> to vector<8x1xf32>
    %cst_27 = arith.constant 3.200000e+01 : f32
    %76 = vector.broadcast %cst_27 : f32 to vector<8x1xf32>
    %77 = arith.divf %75, %76 : vector<8x1xf32>
    %78 = vector.broadcast %77 : vector<8x1xf32> to vector<8x32xf32>
    %79 = arith.subf %73, %78 : vector<8x32xf32>
    %80 = arith.mulf %79, %79 : vector<8x32xf32>
    %cst_28 = arith.constant dense<0.000000e+00> : vector<8xf32>
    %81 = vector.multi_reduction <add>, %80, %cst_28 [1] : vector<8x32xf32> to vector<8xf32>
    %82 = vector.shape_cast %81 : vector<8xf32> to vector<8x1xf32>
    %cst_29 = arith.constant 3.200000e+01 : f32
    %83 = vector.broadcast %cst_29 : f32 to vector<8x1xf32>
    %84 = arith.divf %82, %83 : vector<8x1xf32>
    %85 = vector.broadcast %77 : vector<8x1xf32> to vector<8x32xf32>
    %86 = arith.subf %73, %85 : vector<8x32xf32>
    %cst_30 = arith.constant 9.99999974E-6 : f32
    %87 = vector.broadcast %cst_30 : f32 to vector<8x1xf32>
    %88 = arith.addf %84, %87 : vector<8x1xf32>
    %89 = math.rsqrt %88 : vector<8x1xf32>
    %90 = vector.broadcast %89 : vector<8x1xf32> to vector<8x32xf32>
    %91 = arith.mulf %86, %90 : vector<8x32xf32>
    %92 = vector.broadcast %62 : vector<1x32xf32> to vector<8x32xf32>
    %93 = arith.mulf %91, %92 : vector<8x32xf32>
    %94 = vector.broadcast %63 : vector<1x32xf32> to vector<8x32xf32>
    %95 = arith.addf %93, %94 : vector<8x32xf32>
    %c0_31 = arith.constant 0 : index
    %c0_32 = arith.constant 0 : index
    %c0_33 = arith.constant 0 : index
    %96 = vector.load %arg5[%c0_31, %c0_32, %c0_33] : memref<2x32x64xf32, #tpu.memory_space<vmem>>, vector<1x32x64xf32>
    %97 = vector.shape_cast %96 : vector<1x32x64xf32> to vector<32x64xf32>
    %c1 = arith.constant 1 : index
    %c0_34 = arith.constant 0 : index
    %c0_35 = arith.constant 0 : index
    %98 = vector.load %arg5[%c1, %c0_34, %c0_35] : memref<2x32x64xf32, #tpu.memory_space<vmem>>, vector<1x32x64xf32>
    %99 = vector.shape_cast %98 : vector<1x32x64xf32> to vector<32x64xf32>
    %cst_36 = arith.constant dense<0.000000e+00> : vector<8x64xf32>
    %100 = tpu.matmul %95, %97, %cst_36 {dimension_numbers = #tpu.dot_dimension_numbers<[1], [0], [0], [1], [0, 0, 1, 1], [], []>} : vector<8x32xf32>, vector<32x64xf32>, vector<8x64xf32> -> vector<8x64xf32>
    %101 = vector.broadcast %67 : vector<1x64xf32> to vector<8x64xf32>
    %102 = arith.addf %100, %101 : vector<8x64xf32>
    %cst_37 = arith.constant 0.000000e+00 : f32
    %103 = vector.broadcast %cst_37 : f32 to vector<8x64xf32>
    %104 = arith.maximumf %102, %103 : vector<8x64xf32>
    "tpu.trace_start"() <{level = 10 : i32, message = "sf,ef->se"}> : () -> ()
    %cst_38 = arith.constant dense<0.000000e+00> : vector<8x32xf32>
    %105 = tpu.matmul %104, %99, %cst_38 {dimension_numbers = #tpu.dot_dimension_numbers<[1], [1], [0], [0], [0, 0, 1, 0], [], []>} : vector<8x64xf32>, vector<32x64xf32>, vector<8x32xf32> -> vector<8x32xf32>
    "tpu.trace_stop"() : () -> ()
    %106 = vector.broadcast %64 : vector<1x32xf32> to vector<8x32xf32>
    %107 = arith.addf %105, %106 : vector<8x32xf32>
    %108 = arith.addf %95, %107 : vector<8x32xf32>
    %cst_39 = arith.constant dense<0.000000e+00> : vector<8xf32>
    %109 = vector.multi_reduction <add>, %108, %cst_39 [1] : vector<8x32xf32> to vector<8xf32>
    %110 = vector.shape_cast %109 : vector<8xf32> to vector<8x1xf32>
    %cst_40 = arith.constant 3.200000e+01 : f32
    %111 = vector.broadcast %cst_40 : f32 to vector<8x1xf32>
    %112 = arith.divf %110, %111 : vector<8x1xf32>
    %113 = vector.broadcast %112 : vector<8x1xf32> to vector<8x32xf32>
    %114 = arith.subf %108, %113 : vector<8x32xf32>
    %115 = arith.mulf %114, %114 : vector<8x32xf32>
    %cst_41 = arith.constant dense<0.000000e+00> : vector<8xf32>
    %116 = vector.multi_reduction <add>, %115, %cst_41 [1] : vector<8x32xf32> to vector<8xf32>
    %117 = vector.shape_cast %116 : vector<8xf32> to vector<8x1xf32>
    %cst_42 = arith.constant 3.200000e+01 : f32
    %118 = vector.broadcast %cst_42 : f32 to vector<8x1xf32>
    %119 = arith.divf %117, %118 : vector<8x1xf32>
    %120 = vector.broadcast %112 : vector<8x1xf32> to vector<8x32xf32>
    %121 = arith.subf %108, %120 : vector<8x32xf32>
    %cst_43 = arith.constant 9.99999974E-6 : f32
    %122 = vector.broadcast %cst_43 : f32 to vector<8x1xf32>
    %123 = arith.addf %119, %122 : vector<8x1xf32>
    %124 = math.rsqrt %123 : vector<8x1xf32>
    %125 = vector.broadcast %124 : vector<8x1xf32> to vector<8x32xf32>
    %126 = arith.mulf %121, %125 : vector<8x32xf32>
    %127 = vector.broadcast %65 : vector<1x32xf32> to vector<8x32xf32>
    %128 = arith.mulf %126, %127 : vector<8x32xf32>
    %129 = vector.broadcast %66 : vector<1x32xf32> to vector<8x32xf32>
    %130 = arith.addf %128, %129 : vector<8x32xf32>
    %c0_44 = arith.constant 0 : index
    %c0_45 = arith.constant 0 : index
    %c0_46 = arith.constant 0 : index
    %131 = vector.load %arg7[%c0_44, %c0_45, %c0_46] : memref<1x8x32xf32, #tpu.memory_space<vmem>>, vector<1x8x32xf32>
    %132 = vector.shape_cast %131 : vector<1x8x32xf32> to vector<8x32xf32>
    %133 = vector.shape_cast %130 : vector<8x32xf32> to vector<1x8x32xf32>
    tpu.vector_store %arg7[%c0_44, %c0_45, %c0_46], %133 {strides = array<i32>} : memref<1x8x32xf32, #tpu.memory_space<vmem>>, vector<1x8x32xf32>,
    return
  }
  func.func @transform_0(%arg0: i32) -> (i32, i32, i32, i32) {
    %c0_i32 = arith.constant 0 : i32
    %c0_i32_0 = arith.constant 0 : i32
    %c0_i32_1 = arith.constant 0 : i32
    %c0_i32_2 = arith.constant 0 : i32
    return %arg0, %c0_i32, %c0_i32_0, %c0_i32_1 : i32, i32, i32, i32
  }
  func.func @transform_1(%arg0: i32) -> (i32, i32, i32) {
    %c0_i32 = arith.constant 0 : i32
    %c0_i32_0 = arith.constant 0 : i32
    %c0_i32_1 = arith.constant 0 : i32
    return %arg0, %c0_i32, %c0_i32_0 : i32, i32, i32
  }
  func.func @transform_2(%arg0: i32) -> (i32, i32, i32, i32) {
    %c0_i32 = arith.constant 0 : i32
    %c0_i32_0 = arith.constant 0 : i32
    %c0_i32_1 = arith.constant 0 : i32
    %c0_i32_2 = arith.constant 0 : i32
    %c0_i32_3 = arith.constant 0 : i32
    return %c0_i32, %c0_i32_0, %c0_i32_1, %c0_i32_2 : i32, i32, i32, i32
  }
  func.func @transform_3(%arg0: i32) -> (i32, i32, i32) {
    %c0_i32 = arith.constant 0 : i32
    %c0_i32_0 = arith.constant 0 : i32
    %c0_i32_1 = arith.constant 0 : i32
    %c0_i32_2 = arith.constant 0 : i32
    return %c0_i32, %c0_i32_0, %c0_i32_1 : i32, i32, i32
  }
  func.func @transform_4(%arg0: i32) -> (i32, i32, i32) {
    %c0_i32 = arith.constant 0 : i32
    %c0_i32_0 = arith.constant 0 : i32
    %c0_i32_1 = arith.constant 0 : i32
    %c0_i32_2 = arith.constant 0 : i32
    return %c0_i32, %c0_i32_0, %c0_i32_1 : i32, i32, i32
  }
  func.func @transform_5(%arg0: i32) -> (i32, i32) {
    %c0_i32 = arith.constant 0 : i32
    %c0_i32_0 = arith.constant 0 : i32
    %c0_i32_1 = arith.constant 0 : i32
    return %c0_i32, %c0_i32_0 : i32, i32
  }
  func.func @transform_6(%arg0: i32) -> (i32, i32, i32) {
    %c0_i32 = arith.constant 0 : i32
    %c0_i32_0 = arith.constant 0 : i32
    %c0_i32_1 = arith.constant 0 : i32
    return %arg0, %c0_i32, %c0_i32_0 : i32, i32, i32
  }
}

</mosaic_0001>

<bundles_post_ra>
// kernel: tpu_custom_call.1
= control target key start
LH: loop header
LB: loop body
LE: loop exit
PB: predicated region body
PF: predicated region fallthrough
CT: control target
= control target key end

     0   :  { %11 = vsyncpa [#allocation3], 0  ;;  %s1826_s0 = inlined_call_operand.vmem [shape: f32[2,3,8,32], index: 0, kind: input, shape index: {}]   ;;  %s1827_s1 = inlined_call_operand.vmem [shape: f32[2,8,8], index: 1, kind: input, shape index: {}]   ;;  %s1828_s2 = inlined_call_operand.vmem [shape: f32[3,4,40,8], index: 2, kind: input, shape index: {}]   ;;  %s1829_s3 = inlined_call_operand.vmem [shape: f32[4,8,32], index: 3, kind: input, shape index: {}]   ;;  %s1830_s4 = inlined_call_operand.vmem [shape: f32[2,32,64], index: 4, kind: input, shape index: {}]   ;;  %s1831_s5 = inlined_call_operand.vmem [shape: f32[8,64], index: 5, kind: input, shape index: {}]   ;;  %s1832_s6 = inlined_call_operand.hbm [shape: f32[2,8,32], index: 6, kind: output, shape index: {}]  }
   0x1   :  { %13 = vsyncpa [#allocation3 + $0x1], 0  ;;  %s1435_s21 = smov 0   ;;  %s1437_s22 = smov 0  }
   0x2   :  { %s1439_s23 = smov 0   ;;  %s1441_s24 = smov 0  }
   0x3 LB: > { %s1456_s25 = sadd.s32 4294967295, %s1397_s24   ;;  %s1223_s26 = sadd.s32 4294967294, %s1397_s24   ;;  %s1397_s24 = sphi %s1441_s24, %s1838_s24   ;;  %s1393_s23 = sphi %s1439_s23, %s1837_s23   ;;  %s1389_s22 = sphi %s1437_s22, %s1836_s22   ;;  %s1385_s21 = sphi %s1435_s21, %s1835_s21  }
   0x4   : > { %s1460_s27 = sadd.s32 1, %s1397_s24   ;;  %s162_s28 = sadd.s32 1, %s1393_s23 }
   0x5   : > { %s159_s29 = ssub.s32 %s1397_s24, %s1460_s27  ;;  %p172_p0 = scmp.ne.s32.totalorder %s1393_s23, %s1389_s22 }
   0x6   : > { %p160_p1 = scmp.eq.s32.totalorder %s159_s29, 0  ;;  %p173_p2 = scmp.eq.s32.totalorder %s1456_s25, 1 }
   0x7   : > { %p178_p3 = scmp.ne.s32.totalorder %s1389_s22, %s1385_s21  ;;  %p179_p4 = scmp.eq.s32.totalorder %s1223_s26, 1 }
   0x8   : > { %s1471_s30 = scalar_select %p160_p1, %s1393_s23, %s162_s28  }
   0x9   : > { %p1473_p5 = por %p173_p2, %p172_p0  ;;  %p1477_p6 = por %p179_p4, %p178_p3 }
   0xa   : > { %p1226_p7 = scmp.ge.s32.totalorder %s1397_s24, 1  ;;  %p224_p8 = scmp.lt.s32.totalorder %s1397_s24, 3 }
   0xc   : > { %p225_p9 = pnand %p1226_p7, %p224_p8 }
   0xd   : > { %p258_p10 = scmp.lt.s32.totalorder (!%p225_p9), %s1456_s25, 1  ;;  %s1269_s13 = sshll.u32 (!%p225_p9), %s1456_s25, 3 }
   0xe   : > { %228 = sbr.rel (%p225_p9) target bundleno = 1658 (0x67a), region = 44  ;;  %s1355_s28 = scalar_lea.hbm (!%p225_p9), %s1832_s6, 16 }
  0x13   : > { %v273_v0 = vld [vmem:[%s1828_s2 + $0x18] sm:$0xff]  ;;  %v278_v1 = vld [vmem:[%s1828_s2 + $0x40] sm:$0xff]  ;;  %v272_v2 = vld [vmem:[%s1828_s2 + $0x10] sm:$0xff]  ;;  %s1512_s12 = scalar_select %p258_p10, %s1456_s25, 1  ;;  %vm334_vm0 = vcmask 261120   ;;  %vm592_vm1 = vcmask 64512  }
  0x14   : > { %350 = vmatpush.msra.mxu0 %v273_v0  ;;  %370 = vmatpush.msra.mxu2 %v278_v1  ;;  %v277_v3 = vld [vmem:[%s1828_s2 + $0x38] sm:$0xff]  ;;  %v298_v4 = vld [vmem:[%s1828_s2 + $0xe0] sm:$0xff]  ;;  %v271_v5 = vld [vmem:[%s1828_s2 + $0x8] sm:$0xff] }
  0x15   : > { %457 = vmatpush.msra.mxu1 %v298_v4  ;;  %v276_v6 = vld [vmem:[%s1828_s2 + $0x30] sm:$0xff]  ;;  %v297_v8 = vld [vmem:[%s1828_s2 + $0xd8] sm:$0xff]  ;;  %v287_v9 = vld [vmem:[%s1828_s2 + $0x88] sm:$0xff]  ;;  %s1272_s19 = smul.u32 24, %s1512_s12  ;;  %s1229_s10 = sshll.u32 %s1512_s12, 3 }
  0x16   : > { %v288_v7 = vld [vmem:[%s1828_s2 + $0x90] sm:$0xff]  ;;  %351 = vmatpush.msra.mxu0 %v272_v2  ;;  %371 = vmatpush.msra.mxu2 %v277_v3  ;;  %v270_v10 = vld [vmem:[%s1828_s2] sm:$0xff]  ;;  %v275_v11 = vld [vmem:[%s1828_s2 + $0x28] sm:$0xff]  ;;  %s266_s14 = scalar_lea.vmem %s1827_s1, %s1229_s10  ;;  %s255_s10 = sand.u32 1, %s1389_s22  }
  0x17   : > { %410 = vmatpush.msra.mxu3 %v288_v7  ;;  %458 = vmatpush.msra.mxu1 %v297_v8  ;;  %v296_v12 = vld [vmem:[%s1828_s2 + $0xd0] sm:$0xff]  ;;  %s1530_s9 = scalar_lea.vmem %s1826_s0, %s1272_s19  ;;  %v283_v13 = vld [vmem:[%s1828_s2 + $0x68] sm:$0xff]  ;;  %v293_v14 = vld [vmem:[%s1828_s2 + $0xb8] sm:$0xff]  ;;  %s1227_s11 = sshll.u32 %s255_s10, 3 }
  0x18   : > { %352 = vmatpush.msra.mxu0 %v271_v5  ;;  %372 = vmatpush.msra.mxu2 %v276_v6  ;;  %v1539_v15 = vld [vmem:[%s1530_s9] sm:$0xff]  ;;  %v295_v17 = vld [vmem:[%s1828_s2 + $0xc8] sm:$0xff]  ;;  %v292_v19 = vld [vmem:[%s1828_s2 + $0xb0] sm:$0xff]  ;;  %s257_s15 = scalar_lea.vmem [#allocation2], %s1227_s11  ;;  %s1137_s25 = scalar_lea.sflag [#allocation3], %s255_s10 }
  0x19   : > { %411 = vmatpush.msra.mxu3 %v287_v9  ;;  %459 = vmatpush.msra.mxu1 %v296_v12  ;;  %v286_v16 = vld [vmem:[%s1828_s2 + $0x80] sm:$0xff]  ;;  %v268_v20 = vld [vmem:[%s1530_s9 + $0x8] sm:$0xff]  ;;  %v285_v21 = vld [vmem:[%s1828_s2 + $0x78] sm:$0xff]  ;;  %s1149_s16 = sshll.u32 %s257_s15, 4  ;;  %s1150_s16 = int_to_ptr.vmem [resolvable:$true] %s1149_s16 }
  0x1a   : > { %353 = vmatpush.msra.mxu0 %v270_v10  ;;  %373 = vmatpush.msra.mxu2 %v275_v11  ;;  %v282_v18 = vld [vmem:[%s1828_s2 + $0x60] sm:$0xff]  ;;  %v281_v22 = vld [vmem:[%s1828_s2 + $0x58] sm:$0xff]  ;;  %v291_v23 = vld [vmem:[%s1828_s2 + $0xa8] sm:$0xff] }
  0x1b   : > { %1230 = vmatmul.msk.f32.vlgmr.msra.gmra.mxu0 %vm334_vm0, %v1539_v15  ;;  %1231 = vmatmul.msk.f32.vlgmr.msra.gmra.mxu2 %vm334_vm0, %v1539_v15  ;;  %v308_v24 = vld [vmem:[%s1828_s2 + $0x130] sm:$0xff]  ;;  %v318_v26 = vld [vmem:[%s1828_s2 + $0x180] sm:$0xff]  ;;  %v307_v28 = vld [vmem:[%s1828_s2 + $0x128] sm:$0xff] }
  0x1c   : > { %390 = vmatpush.msrb.mxu2 %v283_v13  ;;  %437 = vmatpush.msrb.mxu0 %v293_v14  ;;  %v280_v25 = vld [vmem:[%s1828_s2 + $0x50] sm:$0xff]  ;;  %v290_v27 = vld [vmem:[%s1828_s2 + $0xa0] sm:$0xff]  ;;  %v303_v29 = vld [vmem:[%s1828_s2 + $0x108] sm:$0xff] }
  0x1d   : > { %412 = vmatpush.msra.mxu3 %v286_v16  ;;  %460 = vmatpush.msra.mxu1 %v295_v17  ;;  %v317_v30 = vld [vmem:[%s1828_s2 + $0x178] sm:$0xff]  ;;  %v306_v31 = vld [vmem:[%s1828_s2 + $0x120] sm:$0xff]  ;;  %v316_v34 = vld [vmem:[%s1828_s2 + $0x170] sm:$0xff] }
  0x1e   : > { %391 = vmatpush.msrb.mxu2 %v282_v18  ;;  %438 = vmatpush.msrb.mxu0 %v292_v19  ;;  %v313_v32 = vld [vmem:[%s1828_s2 + $0x158] sm:$0xff]  ;;  %v302_v33 = vld [vmem:[%s1828_s2 + $0x100] sm:$0xff]  ;;  %v300_v37 = vld [vmem:[%s1828_s2 + $0xf0] sm:$0xff] }
  0x1f   : > { %1235 = vmatmul.msk.f32.vlgmr.msra.gmra.mxu1 %vm334_vm0, %v268_v20  ;;  %413 = vmatpush.msra.mxu3 %v285_v21  ;;  %v305_v35 = vld [vmem:[%s1828_s2 + $0x118] sm:$0xff]  ;;  %v315_v38 = vld [vmem:[%s1828_s2 + $0x168] sm:$0xff]  ;;  %v312_v39 = vld [vmem:[%s1828_s2 + $0x150] sm:$0xff] }
  0x20   : > { %392 = vmatpush.msrb.mxu2 %v281_v22  ;;  %1233 = vmatmul.msk.f32.vlgmr.msra.gmra.mxu3 %vm334_vm0, %v1539_v15  ;;  %v301_v36 = vld [vmem:[%s1828_s2 + $0xf8] sm:$0xff]  ;;  %v269_v40 = vld [vmem:[%s1530_s9 + $0x10] sm:$0xff]  ;;  %v311_v41 = vld [vmem:[%s1828_s2 + $0x148] sm:$0xff]  ;;  %s1147_s9 = scalar_lea.hbm %s1832_s6, %s1269_s13 }
  0x21   : > { %439 = vmatpush.msrb.mxu0 %v291_v23  ;;  %497 = vmatpush.msrb.mxu3 %v308_v24  ;;  %v310_v42 = vld [vmem:[%s1828_s2 + $0x140] sm:$0xff]  ;;  %v328_v43 = vld [vmem:[%s1828_s2 + $0x1d0] sm:$0xff]  ;;  %v327_v44 = vld [vmem:[%s1828_s2 + $0x1c8] sm:$0xff]  ;;  %s1151_s17 = sshll.u32 %s1147_s9, 4  ;;  %s1152_s17 = int_to_ptr.hbm [resolvable:$true] %s1151_s17 }
  0x22   : > { %393 = vmatpush.msrb.mxu2 %v280_v25  ;;  %544 = vmatpush.msrb.mxu1 %v318_v26  ;;  %v323_v45 = vld [vmem:[%s1828_s2 + $0x1a8] sm:$0xff]  ;;  %v326_v46 = vld [vmem:[%s1828_s2 + $0x1c0] sm:$0xff]  ;;  %v325_v48 = vld [vmem:[%s1828_s2 + $0x1b8] sm:$0xff]  ;;  %s1349_s18 = sshra.s32 %s1152_s17, 4  ;;  %s1350_s18 = int_to_ptr.hbm [resolvable:$true] %s1349_s18 }
  0x23   : > { %440 = vmatpush.msrb.mxu0 %v290_v27  ;;  %1232 = vmatmul.msk.f32.vlgmr.msrb.gmra.mxu2 %vm334_vm0, %v1539_v15  ;;  %v322_v47 = vld [vmem:[%s1828_s2 + $0x1a0] sm:$0xff]  ;;  %v321_v49 = vld [vmem:[%s1828_s2 + $0x198] sm:$0xff]  ;;  %v320_v50 = vld [vmem:[%s1828_s2 + $0x190] sm:$0xff]  ;;  %s1351_s19 = scalar_lea.hbm %s1350_s18, 8  ;;  %p1356_p0 = scmp.lt.s32.totalorder %s1350_s18, %s1832_s6 }
  0x24   : > { %1234 = vmatmul.msk.f32.vlgmr.msrb.gmra.mxu0 %vm334_vm0, %v268_v20  ;;  %498 = vmatpush.msrb.mxu3 %v307_v28  ;;  %v299_v51 = vld [vmem:[%s1828_s2 + $0xe8] sm:$0xff]  ;;  %v294_v56 = vld [vmem:[%s1828_s2 + $0xc0] sm:$0xff]  ;;  %v309_v5 = vld [vmem:[%s1828_s2 + $0x138] sm:$0xff]  ;;  %p1352_p11 = scmp.ne.s32.totalorder %s1350_s18, %s1351_s19  ;;  %p1357_p1 = scmp.lt.s32.totalorder %s1355_s28, %s1351_s19 }
  0x25   : > { %477 = vmatpush.msra.mxu2 %v303_v29  ;;  %545 = vmatpush.msrb.mxu1 %v317_v30  ;;  %v279_v53 = vld [vmem:[%s1828_s2 + $0x48] sm:$0xff]  ;;  %v419_v54 = vperm.slane %v299_v51, 0  ;;  %v274_v57 = vld [vmem:[%s1828_s2 + $0x20] sm:$0xff]  ;;  %v418_v61 = vperm.slane %v294_v56, 0  ;;  %v289_v6 = vld [vmem:[%s1828_s2 + $0x98] sm:$0xff]  ;;  %v421_v7 = vperm.slane %v309_v5, 0 }
  0x26   : > { %499 = vmatpush.msrb.mxu3 %v306_v31  ;;  %524 = vmatpush.msra.mxu0 %v313_v32  ;;  %v331_v55 = vperm.slane %v279_v53, 0  ;;  %v330_v62 = vperm.slane %v274_v57, 0  ;;  %v304_v8 = vld [vmem:[%s1828_s2 + $0x110] sm:$0xff]  ;;  %v333_v9 = vperm.slane %v289_v6, 0  ;;  %v314_v22 = vld [vmem:[%s1828_s2 + $0x160] sm:$0xff]  ;;  %v329_v28 = vld [vmem:[%s1828_s2 + $0x1d8] sm:$0xff]  ;;  %p1353_p12 = pnand %p1352_p11, %p1473_p5  ;;  %p1358_p2 = por %p1357_p1, %p1356_p0 }
  0x27   : > { %478 = vmatpush.msra.mxu2 %v302_v33  ;;  %546 = vmatpush.msrb.mxu1 %v316_v34  ;;  %v284_v10 = vld [vmem:[%s1828_s2 + $0x70] sm:$0xff]  ;;  %v420_v12 = vperm.slane %v304_v8, 0  ;;  %v505_v25 = vperm.slane %v314_v22, 0  ;;  %v508_v29 = vperm.slane %v329_v28, 0 }
  0x28   : > { %500 = vmatpush.msrb.mxu3 %v305_v35  ;;  %525 = vmatpush.msra.mxu0 %v312_v39  ;;  %v332_v16 = vperm.slane %v284_v10, 0  ;;  %v324_v30 = vld [vmem:[%s1828_s2 + $0x1b0] sm:$0xff]  ;;  %p1354_p13 = pneg %p1353_p12 }
  0x29   : > { %479 = vmatpush.msra.mxu2 %v301_v36  ;;  %1237 = vmatmul.msk.f32.vlgmr.msrb.gmra.mxu3 %vm334_vm0, %v268_v20  ;;  %v507_v32 = vperm.slane %v324_v30, 0  ;;  %v701_v36 = vld [vmem:[%s266_s14] sm:$0xff] }
  0x2a   : > { %547 = vmatpush.msrb.mxu1 %v315_v38  ;;  %526 = vmatpush.msra.mxu0 %v311_v41  ;;  %vm702_vm2 = vcmp.eq.f32.partialorder %v701_v36, 0.0  ;;  %p1359_p3 = pnand %p1358_p2, %p1354_p13 }
  0x2b   : > { %480 = vmatpush.msra.mxu2 %v300_v37  ;;  %1239 = vmatmul.msk.f32.vlgmr.msrb.gmra.mxu1 %vm334_vm0, %v269_v40 }
  0x2c   : > { %1236 = vmatmul.msk.f32.vlgmr.msra.gmra.mxu2 %vm334_vm0, %v268_v20  ;;  %527 = vmatpush.msra.mxu0 %v310_v42  ;;  %v319_v20 = vld [vmem:[%s1828_s2 + $0x188] sm:$0xff] }
  0x2d   : > { %1238 = vmatmul.msk.f32.vlgmr.msra.gmra.mxu0 %vm334_vm0, %v269_v40  ;;  %584 = vmatpush.msra.mxu3 %v328_v43  ;;  %v506_v21 = vperm.slane %v319_v20, 0 }
  0x2e   : > { %564 = vmatpush.msrb.mxu2 %v323_v45 }
  0x2f   : > { %585 = vmatpush.msra.mxu3 %v327_v44 }
  0x30   : > { %565 = vmatpush.msrb.mxu2 %v322_v47 }
  0x31   : > { %586 = vmatpush.msra.mxu3 %v326_v46 }
  0x32   : > { %566 = vmatpush.msrb.mxu2 %v321_v49 }
  0x33   : > { %587 = vmatpush.msra.mxu3 %v325_v48 }
  0x34   : > { %1241 = vmatmul.msk.f32.vlgmr.msra.gmra.mxu3 %vm334_vm0, %v269_v40  ;;  %567 = vmatpush.msrb.mxu2 %v320_v50 }
  0x35   : > { %1240 = vmatmul.msk.f32.vlgmr.msrb.gmra.mxu2 %vm334_vm0, %v269_v40 }
  0x98   : > { %v355_v52 = vpop.f32.mrf.mxu0 }
  0x99   : > { %v356_v2 = vadd.f32 %v355_v52, %v330_v62 }
  0x9c   : > { %v462_v58 = vpop.f32.mrf.mxu1 }
  0x9d   : > { %v463_v59 = vadd.f32 %v462_v58, %v419_v54 }
  0x9e   : > { %v375_v60 = vpop.f32.mrf.mxu2 }
  0x9f   : > { %v376_v63 = vadd.f32 %v375_v60, %v331_v55  ;;  %1244 = vmatpush.xpose.msk.msra.mxu1 %vm592_vm1, %v463_v59 }
  0xa1   : > { %v442_v0 = vpop.f32.mrf.mxu0 }
  0xa2   : > { %v443_v1 = vadd.f32 %v442_v0, %v418_v61  ;;  %1245 = vmatmul.msk.f32.vlgmr.msra.gmra.mxu1 %vm592_vm1, %v376_v63 }
  0xa3   : > { %v415_v3 = vpop.f32.mrf.mxu3 }
  0xa4   : > { %1242 = vmatpush.xpose.msk.msrb.mxu0 %vm592_vm1, %v443_v1  ;;  %v416_v14 = vadd.f32 %v415_v3, %v333_v9 }
  0xa6   : > { %v395_v4 = vpop.f32.mrf.mxu2 }
  0xa7   : > { %1243 = vmatmul.msk.f32.vlgmr.msrb.gmra.mxu0 %vm592_vm1, %v356_v2  ;;  %v396_v19 = vadd.f32 %v395_v4, %v332_v16 }
  0xa8   : > { %v549_v23 = vpop.f32.mrf.mxu1 }
  0xa9   : > { %v550_v24 = vadd.f32 %v549_v23, %v506_v21 }
  0xaa   : > { %v529_v26 = vpop.f32.mrf.mxu0 }
  0xab   : > { %846 = vmatpush.msrb.mxu1 %v550_v24  ;;  %v530_v27 = vadd.f32 %v529_v26, %v505_v25 }
  0xac   : > { %v502_v11 = vpop.f32.mrf.mxu3 }
  0xad   : > { %v503_v13 = vadd.f32 %v502_v11, %v421_v7  ;;  %823 = vmatpush.msra.mxu0 %v530_v27 }
  0xaf   : > { %v482_v17 = vpop.f32.mrf.mxu2  ;;  %1248 = vmatpush.xpose.msk.msrb.mxu3 %vm592_vm1, %v503_v13 }
  0xb0   : > { %v483_v18 = vadd.f32 %v482_v17, %v420_v12 }
  0xb2   : > { %1246 = vmatpush.xpose.msk.msra.mxu2 %vm592_vm1, %v483_v18  ;;  %1249 = vmatmul.msk.f32.vlgmr.msrb.gmra.mxu3 %vm592_vm1, %v416_v14 }
  0xb5   : > { %1247 = vmatmul.msk.f32.vlgmr.msra.gmra.mxu2 %vm592_vm1, %v396_v19 }
  0xb7   : > { %v589_v31 = vpop.f32.mrf.mxu3 }
  0xb8   : > { %v590_v33 = vadd.f32 %v589_v31, %v508_v29  ;;  %v569_v34 = vpop.f32.mrf.mxu2 }
  0xb9   : > { %v570_v35 = vadd.f32 %v569_v34, %v507_v32 }
  0xba   : > { %892 = vmatpush.msra.mxu3 %v590_v33 }
  0xbb   : > { %869 = vmatpush.msrb.mxu2 %v570_v35 }
 0x11f   : > { %v642_v39 = vpop.f32.mrf.mxu1 }
 0x120   : > { %v698_v42 = vmul.f32 0.35355338, %v642_v39 }
 0x122   : > { %v706_v43 = vsel %vm702_vm2, -1e+09, %v698_v42 }
 0x123   : > { %v712_v44 = vsel %vm592_vm1, %v706_v43, -inf }
 0x124   : > { %v616_v37 = vpop.f32.mrf.mxu0 }
 0x125   : > { %v697_v38 = vmul.f32 0.35355338, %v616_v37 }
 0x127   : > { %v705_v40 = vsel %vm702_vm2, -1e+09, %v697_v38 }
 0x128   : > { %v709_v41 = vsel %vm592_vm1, %v705_v40, -inf }
 0x129   : > { %710 = vmax.xlane.f32.xlu1 %v709_v41 }
 0x131   : > { %713 = vmax.xlane.f32.xlu1 %v712_v44 }
 0x135   : > { %v694_v47 = vpop.f32.mrf.mxu3 }
 0x136   : > { %v700_v50 = vmul.f32 0.35355338, %v694_v47 }
 0x138   : > { %v668_v45 = vpop.f32.mrf.mxu2  ;;  %v708_v51 = vsel %vm702_vm2, -1e+09, %v700_v50 }
 0x139   : > { %v699_v46 = vmul.f32 0.35355338, %v668_v45  ;;  %v718_v52 = vsel %vm592_vm1, %v708_v51, -inf }
 0x13b   : > { %v707_v48 = vsel %vm702_vm2, -1e+09, %v699_v46 }
 0x13c   : > { %v715_v49 = vsel %vm592_vm1, %v707_v48, -inf }
 0x13d   : > { %716 = vmax.xlane.f32.xlu0 %v715_v49 }
 0x145   : > { %719 = vmax.xlane.f32.xlu0 %v718_v52 }
 0x19c   : > { %v711_v53 = vpop.xlane.xlu1 %710 }
 0x19d   : > { %v721_v54 = vsub.f32 %v705_v40, %v711_v53 }
 0x19f   : > { %v725_v55 = vmul.f32 1.442695, %v721_v54 }
 0x1a1   : > { %1313 = vpow2.f32 %v725_v55 }
 0x1a4   : > { %v714_v56 = vpop.xlane.xlu1 %713 }
 0x1a5   : > { %v722_v57 = vsub.f32 %v706_v43, %v714_v56 }
 0x1a7   : > { %v1314_v58 = vpop.eup %1313  ;;  %v727_v59 = vmul.f32 1.442695, %v722_v57 }
 0x1a8   : > { %v733_v60 = vsel %vm592_vm1, %v1314_v58, 0.0 }
 0x1a9   : > { %1315 = vpow2.f32 %v727_v59  ;;  %734 = vadd.xlane.f32.xlu0 %v733_v60  ;;  %v899_v59 = vld [vmem:[%s1829_s3 + $0x8] sm:$0xff]  ;;  %v900_v60 = vld [vmem:[%s1829_s3 + $0x10] sm:$0xff] }
 0x1aa   : > { %943 = vmatpush.msra.mxu1 %v899_v59  ;;  %966 = vmatpush.msra.mxu2 %v900_v60 }
 0x1af   : > { %v1316_v61 = vpop.eup %1315 }
 0x1b0   : > { %v717_v62 = vpop.xlane.xlu0 %716  ;;  %v736_v63 = vsel %vm592_vm1, %v1316_v61, 0.0 }
 0x1b1   : > { %v723_v0 = vsub.f32 %v707_v48, %v717_v62  ;;  %737 = vadd.xlane.f32.xlu1 %v736_v63 }
 0x1b3   : > { %v729_v1 = vmul.f32 1.442695, %v723_v0 }
 0x1b5   : > { %1317 = vpow2.f32 %v729_v1 }
 0x1b8   : > { %v720_v2 = vpop.xlane.xlu0 %719 }
 0x1b9   : > { %v724_v3 = vsub.f32 %v708_v51, %v720_v2 }
 0x1bb   : > { %v1712_v4 = vpop.eup %1317  ;;  %v731_v5 = vmul.f32 1.442695, %v724_v3 }
 0x1bc   : > { %v739_v6 = vsel %vm592_vm1, %v1712_v4, 0.0 }
 0x1bd   : > { %1319 = vpow2.f32 %v731_v5  ;;  %740 = vadd.xlane.f32.xlu2 %v739_v6 }
 0x1c3   : > { %v1716_v7 = vpop.eup %1319 }
 0x1c4   : > { %v742_v8 = vsel %vm592_vm1, %v1716_v7, 0.0 }
 0x1c5   : > { %743 = vadd.xlane.f32.xlu2 %v742_v8  ;;  %v1748_v8 = vld [vmem:[%s1831_s5] sm:$0xff] }
 0x21c   : > { %v735_v9 = vpop.xlane.xlu0 %734 }
 0x21d   : > { %1321 = vrcp.f32 %v735_v9  ;;  %v756_v14 = vand.u32 2147483648, %v735_v9  ;;  %v754_v17 = vand.u32 2147483647, %v735_v9  ;;  %vm750_vm4 = vweird.f32 %v735_v9 }
 0x21f   : > { %v757_v20 = vor.u32 1.1754944e-38, %v756_v14  ;;  %vm755_vm6 = vcmp.eq.f32.partialorder %v754_v17, 8.507059e+37 }
 0x223   : > { %v1322_v10 = vpop.eup %1321 }
 0x224   : > { %v746_v11 = vmul.f32 %v1322_v10, %v735_v9  ;;  %v738_v12 = vpop.xlane.xlu1 %737  ;;  %vm751_vm3 = vweird.f32 %v1322_v10 }
 0x225   : > { %1323 = vrcp.f32 %v738_v12  ;;  %vm752_vm5 = vmor %vm750_vm4, %vm751_vm3  ;;  %v771_v26 = vand.u32 2147483648, %v738_v12  ;;  %v769_v28 = vand.u32 2147483647, %v738_v12  ;;  %vm765_vm8 = vweird.f32 %v738_v12 }
 0x226   : > { %v747_v13 = vsub.f32 1.0, %v746_v11 }
 0x227   : > { %v772_v31 = vor.u32 1.1754944e-38, %v771_v26  ;;  %vm770_vm10 = vcmp.eq.f32.partialorder %v769_v28, 8.507059e+37 }
 0x228   : > { %v748_v16 = vmul.f32 %v1322_v10, %v747_v13 }
 0x22a   : > { %v749_v18 = vadd.f32 %v1322_v10, %v748_v16 }
 0x22b   : > { %v1324_v19 = vpop.eup %1323 }
 0x22c   : > { %v753_v21 = vsel %vm752_vm5, %v1322_v10, %v749_v18  ;;  %v761_v22 = vmul.f32 %v1324_v19, %v738_v12  ;;  %vm766_vm7 = vweird.f32 %v1324_v19  ;;  %v1001_v12 = vperm.slane %v1748_v8, 0 }
 0x22d   : > { %v758_v23 = vsel %vm755_vm6, %v757_v20, %v753_v21  ;;  %vm767_vm9 = vmor %vm765_vm8, %vm766_vm7  ;;  %vm1072_vm5 = vcmask 523264  }
 0x22e   : > { %v762_v24 = vsub.f32 1.0, %v761_v22  ;;  %v759_v25 = vmul.f32 %v1314_v58, %v758_v23  ;;  %v898_v58 = vld [vmem:[%s1829_s3] sm:$0xff] }
 0x22f   : > { %920 = vmatpush.msrb.mxu0 %v898_v58 }
 0x230   : > { %v763_v27 = vmul.f32 %v1324_v19, %v762_v24  ;;  %v741_v29 = vpop.xlane.xlu2 %740  ;;  %1250 = vmatmul.msk.f32.vlgmr.msra.gmra.mxu0 %vm592_vm1, %v759_v25 }
 0x231   : > { %1325 = vrcp.f32 %v741_v29  ;;  %v786_v39 = vand.u32 2147483648, %v741_v29  ;;  %v784_v41 = vand.u32 2147483647, %v741_v29  ;;  %vm780_vm12 = vweird.f32 %v741_v29 }
 0x232   : > { %v764_v30 = vadd.f32 %v1324_v19, %v763_v27 }
 0x233   : > { %v787_v44 = vor.u32 1.1754944e-38, %v786_v39  ;;  %vm785_vm14 = vcmp.eq.f32.partialorder %v784_v41, 8.507059e+37  ;;  %v1259_v39 = vld [vmem:[%s1830_s4 + $0x28] sm:$0xff] }
 0x234   : > { %v768_v32 = vsel %vm767_vm9, %v1324_v19, %v764_v30  ;;  %v1399_v19 = vmov 32.0  }
 0x235   : > { %v773_v33 = vsel %vm770_vm10, %v772_v31, %v768_v32  ;;  %v1039_v31 = vld [vmem:[%s1830_s4 + $0x10] sm:$0xff]  ;;  %v1038_v32 = vld [vmem:[%s1830_s4 + $0x8] sm:$0xff] }
 0x236   : > { %v774_v34 = vmul.f32 %v1316_v61, %v773_v33  ;;  %v901_v61 = vld [vmem:[%s1829_s3 + $0x18] sm:$0xff]  ;;  %v1037_v33 = vld [vmem:[%s1830_s4] sm:$0xff] }
 0x237   : > { %v1326_v35 = vpop.eup %1325  ;;  %989 = vmatpush.msrb.mxu3 %v901_v61 }
 0x238   : > { %v776_v36 = vmul.f32 %v1326_v35, %v741_v29  ;;  %v744_v37 = vpop.xlane.xlu2 %743  ;;  %1251 = vmatmul.msk.f32.vlgmr.msrb.gmra.mxu1 %vm592_vm1, %v774_v34  ;;  %vm781_vm11 = vweird.f32 %v1326_v35  ;;  %v1261_v34 = vld [vmem:[%s1830_s4 + $0x38] sm:$0xff] }
 0x239   : > { %1327 = vrcp.f32 %v744_v37  ;;  %vm782_vm13 = vmor %vm780_vm12, %vm781_vm11  ;;  %v801_v50 = vand.u32 2147483648, %v744_v37  ;;  %v799_v52 = vand.u32 2147483647, %v744_v37  ;;  %vm795_vm2 = vweird.f32 %v744_v37  ;;  %1263 = vmatpush.xpose.msk.msrb.mxu1 %vm1072_vm5, %v1261_v34 }
 0x23a   : > { %v777_v38 = vsub.f32 1.0, %v776_v36  ;;  %1329 = vrcp.f32 %v1399_v19 }
 0x23b   : > { %v802_v54 = vor.u32 1.1754944e-38, %v801_v50  ;;  %vm800_vm4 = vcmp.eq.f32.partialorder %v799_v52, 8.507059e+37  ;;  %v1258_v52 = vld [vmem:[%s1830_s4 + $0x20] sm:$0xff] }
 0x23c   : > { %v778_v40 = vmul.f32 %v1326_v35, %v777_v38 }
 0x23e   : > { %v779_v42 = vadd.f32 %v1326_v35, %v778_v40 }
 0x23f   : > { %v1328_v43 = vpop.eup %1327 }
 0x240   : > { %v783_v45 = vsel %vm782_vm13, %v1326_v35, %v779_v42  ;;  %v791_v46 = vmul.f32 %v1328_v43, %v744_v37  ;;  %vm796_vm15 = vweird.f32 %v1328_v43  ;;  %v1330_v20 = vpop.eup %1329  ;;  %v1260_v35 = vld [vmem:[%s1830_s4 + $0x30] sm:$0xff] }
 0x241   : > { %v788_v47 = vsel %vm785_vm14, %v787_v44, %v783_v45  ;;  %vm797_vm3 = vmor %vm795_vm2, %vm796_vm15  ;;  %v1008_v21 = vmul.f32 32.0, %v1330_v20  ;;  %1264 = vmatpush.xpose.msk.msrb.mxu1 %vm1072_vm5, %v1260_v35 }
 0x242   : > { %v792_v48 = vsub.f32 1.0, %v791_v46  ;;  %v789_v49 = vmul.f32 %v1712_v4, %v788_v47  ;;  %v1033_v46 = vperm.slane %v1748_v8, 1 }
 0x243   : > { %v1009_v22 = vsub.f32 1.0, %v1008_v21 }
 0x244   : > { %v793_v51 = vmul.f32 %v1328_v43, %v792_v48  ;;  %1252 = vmatmul.msk.f32.vlgmr.msrb.gmra.mxu2 %vm592_vm1, %v789_v49  ;;  %v1035_v49 = vperm.slane %v1748_v8, 2 }
 0x245   : > { %v1010_v23 = vmul.f32 %v1330_v20, %v1009_v22  ;;  %1265 = vmatpush.xpose.msk.msrb.mxu1 %vm1072_vm5, %v1259_v39 }
 0x246   : > { %v794_v53 = vadd.f32 %v1328_v43, %v793_v51 }
 0x247   : > { %v1011_v24 = vadd.f32 %v1330_v20, %v1010_v23 }
 0x248   : > { %v798_v55 = vsel %vm797_vm3, %v1328_v43, %v794_v53  ;;  %v1046_v53 = vperm.slane %v1748_v8, 6 }
 0x249   : > { %v803_v56 = vsel %vm800_vm4, %v802_v54, %v798_v55  ;;  %1266 = vmatpush.xpose.msk.msrb.mxu1 %vm1072_vm5, %v1258_v52 }
 0x24a   : > { %v804_v57 = vmul.f32 %v1716_v7, %v803_v56 }
 0x24c   : > { %1253 = vmatmul.msk.f32.vlgmr.msra.gmra.mxu3 %vm592_vm1, %v804_v57  ;;  %v1071_v57 = vperm.slane %v1748_v8, 3 }
 0x2ad   : > { %v825_v62 = vpop.f32.mrf.mxu0 }
 0x2ae   : > { %1254 = vmatmul.msk.f32.vlgmr.msrb.gmra.mxu0 %vm592_vm1, %v825_v62 }
 0x2b5   : > { %v848_v63 = vpop.f32.mrf.mxu1 }
 0x2b6   : > { %1255 = vmatmul.msk.f32.vlgmr.msra.gmra.mxu1 %vm592_vm1, %v848_v63 }
 0x2c7   : > { %v871_v0 = vpop.f32.mrf.mxu2 }
 0x2c8   : > { %1256 = vmatmul.msk.f32.vlgmr.msra.gmra.mxu2 %vm592_vm1, %v871_v0 }
 0x2cf   : > { %v894_v1 = vpop.f32.mrf.mxu3 }
 0x2d0   : > { %1257 = vmatmul.msk.f32.vlgmr.msrb.gmra.mxu3 %vm592_vm1, %v894_v1  ;;  %vm1012_vm1 = vweird.f32 %v1330_v20 }
 0x2d1   : > { %v1013_v25 = vsel %vm1012_vm1, %v1330_v20, %v1011_v24 }
 0x32b   : > { %v922_v3 = vpop.f32.mrf.mxu0 }
 0x32c   : > { %v994_v6 = vsel %vm334_vm0, %v922_v3, 0.0 }
 0x333   : > { %v945_v2 = vpop.f32.mrf.mxu1 }
 0x334   : > { %v995_v5 = vsel %vm334_vm0, %v945_v2, 0.0 }
 0x335   : > { %v996_v9 = vadd.f32 %v995_v5, %v994_v6 }
 0x34b   : > { %v968_v4 = vpop.f32.mrf.mxu2 }
 0x34c   : > { %v997_v7 = vsel %vm334_vm0, %v968_v4, 0.0 }
 0x34d   : > { %v998_v10 = vadd.f32 %v997_v7, %v996_v9 }
 0x353   : > { %v991_v11 = vpop.f32.mrf.mxu3 }
 0x354   : > { %v999_v13 = vsel %vm334_vm0, %v991_v11, 0.0 }
 0x355   : > { %v1000_v14 = vadd.f32 %v999_v13, %v998_v10  ;;  %v1131_v13 = vperm.slane %v1748_v8, 4 }
 0x357   : > { %v1002_v16 = vadd.f32 %v1001_v12, %v1000_v14 }
 0x359   : > { %v1003_v17 = vadd.f32 %v1002_v16, %v1539_v15  ;;  %v1040_v15 = vld [vmem:[%s1830_s4 + $0x18] sm:$0xff] }
 0x35a   : > { %1062 = vmatpush.msra.mxu0 %v1040_v15 }
 0x35b   : > { %v1004_v18 = vsel %vm334_vm0, %v1003_v17, 0.0 }
 0x35c   : > { %1005 = vadd.xlane.f32.xlu2 %v1004_v18  ;;  %1063 = vmatpush.msra.mxu0 %v1039_v31 }
 0x35e   : > { %1064 = vmatpush.msra.mxu0 %v1038_v32 }
 0x360   : > { %1065 = vmatpush.msra.mxu0 %v1037_v33 }
 0x3cf   : > { %v1006_v26 = vpop.xlane.xlu2 %1005 }
 0x3d0   : > { %v1014_v27 = vmul.f32 %v1013_v25, %v1006_v26 }
 0x3d2   : > { %v1015_v28 = vsub.f32 %v1003_v17, %v1014_v27  ;;  %v1133_v17 = vperm.slane %v1748_v8, 5 }
 0x3d4   : > { %v1016_v29 = vmul.f32 %v1015_v28, %v1015_v28 }
 0x3d6   : > { %v1017_v30 = vsel %vm334_vm0, %v1016_v29, 0.0 }
 0x3d7   : > { %1018 = vadd.xlane.f32.xlu0 %v1017_v30 }
 0x44a   : > { %v1019_v36 = vpop.xlane.xlu0 %1018 }
 0x44b   : > { %v1020_v37 = vmul.f32 %v1019_v36, %v1013_v25 }
 0x44d   : > { %v1021_v38 = vadd.f32 1e-05, %v1020_v37 }
 0x44f   : > { %1331 = vrsqrt.f32 %v1021_v38  ;;  %vm1028_vm7 = vweird.f32 %v1021_v38 }
 0x455   : > { %v1332_v40 = vpop.eup %1331 }
 0x456   : > { %v1023_v41 = vmul.f32 %v1332_v40, %v1021_v38  ;;  %vm1029_vm6 = vweird.f32 %v1332_v40 }
 0x457   : > { %vm1030_vm8 = vmor %vm1028_vm7, %vm1029_vm6 }
 0x458   : > { %v1024_v42 = vmul.f32 %v1332_v40, %v1023_v41 }
 0x45a   : > { %v1025_v43 = vmul.f32 0.5, %v1024_v42 }
 0x45c   : > { %v1026_v44 = vsub.f32 1.5, %v1025_v43 }
 0x45e   : > { %v1027_v45 = vmul.f32 %v1332_v40, %v1026_v44 }
 0x460   : > { %v1031_v47 = vsel %vm1030_vm8, %v1332_v40, %v1027_v45 }
 0x461   : > { %v1032_v48 = vmul.f32 %v1031_v47, %v1015_v28 }
 0x463   : > { %v1034_v50 = vmul.f32 %v1033_v46, %v1032_v48 }
 0x465   : > { %v1036_v51 = vadd.f32 %v1035_v49, %v1034_v50 }
 0x467   : > { %1262 = vmatmul.msk.f32.vlgmr.msra.gmra.mxu0 %vm334_vm0, %v1036_v51 }
 0x4e4   : > { %v1067_v54 = vpop.f32.mrf.mxu0 }
 0x4e5   : > { %v1068_v55 = vadd.f32 %v1067_v54, %v1046_v53 }
 0x4e7   : > { %v1070_v56 = vmax.f32 %v1068_v55, 0.0 }
 0x4e9   : > { %1267 = vmatmul.msk.f32.vlgmr.msrb.gmra.mxu1 %vm1072_vm5, %v1070_v56 }
 0x566   : > { %v1105_v58 = vpop.f32.mrf.mxu1 }
 0x567   : > { %v1106_v59 = vadd.f32 %v1105_v58, %v1071_v57 }
 0x569   : > { %v1108_v60 = vadd.f32 %v1106_v59, %v1036_v51 }
 0x56b   : > { %v1109_v61 = vsel %vm334_vm0, %v1108_v60, 0.0 }
 0x56c   : > { %1110 = vadd.xlane.f32.xlu1 %v1109_v61 }
 0x5df   : > { %v1111_v62 = vpop.xlane.xlu1 %1110 }
 0x5e0   : > { %v1112_v63 = vmul.f32 %v1111_v62, %v1013_v25 }
 0x5e2   : > { %v1113_v0 = vsub.f32 %v1108_v60, %v1112_v63 }
 0x5e4   : > { %v1114_v1 = vmul.f32 %v1113_v0, %v1113_v0 }
 0x5e6   : > { %v1115_v2 = vsel %vm334_vm0, %v1114_v1, 0.0 }
 0x5e7   : > { %1116 = vadd.xlane.f32.xlu2 %v1115_v2 }
 0x65a   : > { %v1117_v3 = vpop.xlane.xlu2 %1116 }
 0x65b   : > { %v1118_v4 = vmul.f32 %v1117_v3, %v1013_v25 }
 0x65d   : > { %v1119_v5 = vadd.f32 1e-05, %v1118_v4 }
 0x65f   : > { %1333 = vrsqrt.f32 %v1119_v5  ;;  %vm1126_vm10 = vweird.f32 %v1119_v5 }
 0x665   : > { %v1334_v6 = vpop.eup %1333 }
 0x666   : > { %v1121_v7 = vmul.f32 %v1334_v6, %v1119_v5  ;;  %vm1127_vm9 = vweird.f32 %v1334_v6 }
 0x667   : > { %vm1128_vm11 = vmor %vm1126_vm10, %vm1127_vm9 }
 0x668   : > { %v1122_v9 = vmul.f32 %v1334_v6, %v1121_v7 }
 0x66a   : > { %v1123_v10 = vmul.f32 0.5, %v1122_v9 }
 0x66c   : > { %v1124_v11 = vsub.f32 1.5, %v1123_v10 }
 0x66e   : > { %v1125_v12 = vmul.f32 %v1334_v6, %v1124_v11 }
 0x670   : > { %v1129_v14 = vsel %vm1128_vm11, %v1334_v6, %v1125_v12 }
 0x671   : > { %v1130_v16 = vmul.f32 %v1129_v14, %v1113_v0 }
 0x673   : > { %v1132_v18 = vmul.f32 %v1131_v13, %v1130_v16 }
 0x675   : > { %v1134_v19 = vadd.f32 %v1133_v17, %v1132_v18 }
 0x677   : > { %1135 = vst.msk [vmem:[%s257_s15] sm:$0xff] %vm334_vm0, %v1134_v19 }
 0x678   : > { %1362 = shalt.err (!%p1359_p3)
}
 0x679   : > { %1273 = dma.vmem_to_hbm [thread:$0]  (%p1473_p5), %s1150_s16, 128, %s1152_s17, %s1137_s25  }
 0x67a PF: > { %p1279_p4 = scmp.ge.s32.totalorder %s1397_s24, 2  ;;  %s1163_s10 = sand.u32 1, %s1385_s21  }
 0x67b   : > { %s1164_s13 = scalar_lea.sflag [#allocation3], %s1163_s10 }
 0x67c   : > { %p1276_p7 = pnand %p1279_p4, %p1477_p6 }
 0x67e   : > { %p1277_p8 = pneg %p1276_p7 }
 0x680   : > { %1380 = dma.done.wait (%p1277_p8), %s1164_s13, 128  }
 0x681   : > { %1382 = vsyncadd (%p1277_p8), %s1164_s13, 4294967168  ;;  %p16_p9 = scmp.ge.s32.totalorder %s1460_s27, 4   ;;  %s1835_s21 = smov %s1389_s22 }
 0x682   : > { %s1836_s22 = smov %s1393_s23  ;;  %s1837_s23 = smov %s1471_s30 }
 0x683   : > { %s1838_s24 = smov %s1460_s27  ;;  %18 = sbr.rel (!%p16_p9) target bundleno = 3 (0x3), region = 83 }
 0x688   :  { %1170 = vsyncpa [#allocation3], 1 }
 0x689   :  { %1172 = vsyncpa [#allocation3 + $0x1], 1 }

</bundles_post_ra>
